<compile_context>
chip_gen: v7x
topology: tpu7x:2x2x1
jax: 0.10.0
libtpu: 0.0.40
codegen_flags: <defaults>
</compile_context>

<pallas_src>
import jax
import jax.numpy as jnp
from jax.experimental import pallas as pl
from jax.experimental.pallas import tpu as pltpu


# ----------------------------------------------------------------------------
# Kernels
# ----------------------------------------------------------------------------

def _supernet_small_kernel(aw_ref, x_ref, w1_ref, w2_ref, beff_ref, o_ref):
    # aw_ref  : (2,)       SMEM  (softmaxed arch weights)
    # x_ref   : (B, In)    VMEM
    # w*_ref  : (In, Out)  VMEM
    # beff_ref: (1, Out)   VMEM  (a0*b1 + a1*b2, combined in the wrapper)
    # o_ref   : (B, Out)   VMEM
    a0 = aw_ref[0]
    a1 = aw_ref[1]
    x = x_ref[...]
    y = (a0 * jnp.dot(x, w1_ref[...], preferred_element_type=jnp.float32)
         + a1 * jnp.dot(x, w2_ref[...], preferred_element_type=jnp.float32)
         + beff_ref[...])
    o_ref[...] = jnp.maximum(y, 0.0).astype(o_ref.dtype)


def _supernet_tiled_kernel(aw_ref, x_ref, w1_ref, w2_ref, beff_ref, o_ref):
    # aw_ref  : (2,)      SMEM (scalar-prefetched softmaxed arch weights)
    # x_ref   : (tm, tk)  VMEM
    # w*_ref  : (tk, tn)  VMEM
    # beff_ref: (1, tn)   VMEM
    # o_ref   : (tm, tn)  VMEM f32 -- resident across the K axis (index_map
    #           ignores k), so it doubles as the accumulator (no scratch).
    k = pl.program_id(2)
    a0 = aw_ref[0]
    a1 = aw_ref[1]

    @pl.when(k == 0)
    def _init():
        o_ref[...] = jnp.zeros_like(o_ref)

    # Two MXU dots into the resident accumulator. Avoids materializing a
    # (tk, tn) W_eff intermediate (which spilled through VMEM); works the same
    # on v5e/v6e/v7x.
    x = x_ref[...]
    o_ref[...] += (a0 * jnp.dot(x, w1_ref[...], preferred_element_type=jnp.float32)
                   + a1 * jnp.dot(x, w2_ref[...], preferred_element_type=jnp.float32))

    @pl.when(k == pl.num_programs(2) - 1)
    def _finalize():
        o_ref[...] = jnp.maximum(o_ref[...] + beff_ref[...], 0.0)


# ----------------------------------------------------------------------------
# Setup (run once) and forward wrapper
# ----------------------------------------------------------------------------

def _round_up(x, m):
    return ((x + m - 1) // m) * m


def _vmem_capacity_bytes():
    try:
        info = pltpu.get_tpu_info()
        cap = getattr(info, "vmem_capacity_bytes", None)
        if cap:
            return int(cap)
    except Exception:
        pass
    return 64 * 1024 * 1024  # conservative default (v7x per-core)


def _pick_tiles(Kp128, Np128):
    vmem = _vmem_capacity_bytes()
    if vmem >= 96 * 1024 * 1024:
        # v5e / v6e: 128 MiB physical VMEM -> push tiles further.
        tk_max, tn_max, vmem_limit = 2048, 1024, 96 * 1024 * 1024
    else:
        # v7x: 64 MiB physical / 32 MiB default scoped VMEM.
        # 2 weight streams x 2 bufs x tk x tn x 4B ~= 16.8 MiB at 1024x512.
        # tn <= 512 also keeps the N grid splittable across the two TCs.
        tk_max, tn_max, vmem_limit = 1024, 512, 56 * 1024 * 1024
    tk = min(Kp128, tk_max)
    tn = min(Np128, tn_max)
    return tk, tn, vmem_limit


# Per-expert padded weight size below which the grid-less single-block kernel
# is used (the whole problem comfortably lives in VMEM; pipeline/grid overhead
# would dominate).
_SMALL_WEIGHT_BYTES = 2 * 1024 * 1024


def prepare_params(w1, b1, w2, b2):
    """One-time preprocessing of SuperNetBlock parameters (outside hot path).

    w1, w2: (In, Out) -- nn.Linear weights stored transposed for `x @ W`.
    b1, b2: (1, Out)

    For the tiled path the weights/biases are zero-padded here ONCE and cached,
    so the per-call wrapper never re-reads/re-writes the full weight matrices.
    """
    In, Out = w1.shape
    b1 = jnp.reshape(b1, (1, Out))
    b2 = jnp.reshape(b2, (1, Out))
    small = (2 * In * Out * jnp.dtype(w1.dtype).itemsize) <= _SMALL_WEIGHT_BYTES
    params = {"In": In, "Out": Out, "small": small,
              "w1": w1, "w2": w2, "b1": b1, "b2": b2}
    if not small:
        Kp128 = _round_up(In, 128)
        Np128 = _round_up(Out, 128)
        tk, tn, vmem_limit = _pick_tiles(Kp128, Np128)
        Kp = _round_up(In, tk)
        Np = _round_up(Out, tn)
        params.update(
            w1p=jnp.zeros((Kp, Np), w1.dtype).at[:In, :Out].set(w1),
            w2p=jnp.zeros((Kp, Np), w2.dtype).at[:In, :Out].set(w2),
            b1p=jnp.zeros((1, Np), b1.dtype).at[:, :Out].set(b1),
            b2p=jnp.zeros((1, Np), b2.dtype).at[:, :Out].set(b2),
            Kp=Kp, Np=Np, tk=tk, tn=tn, vmem_limit=vmem_limit)
    return params


def _supernet_small(x, params, aw):
    B, _ = x.shape
    Out = params["Out"]
    # Bias combine is O(Out) glue in the wrapper -> single bias input stream.
    b_eff = aw[0] * params["b1"] + aw[1] * params["b2"]
    return pl.pallas_call(
        _supernet_small_kernel,
        out_shape=jax.ShapeDtypeStruct((B, Out), jnp.float32),
        in_specs=[
            pl.BlockSpec(memory_space=pltpu.MemorySpace.SMEM),   # arch weights
            pl.BlockSpec(memory_space=pltpu.MemorySpace.VMEM),   # x
            pl.BlockSpec(memory_space=pltpu.MemorySpace.VMEM),   # w1
            pl.BlockSpec(memory_space=pltpu.MemorySpace.VMEM),   # w2
            pl.BlockSpec(memory_space=pltpu.MemorySpace.VMEM),   # b_eff
        ],
        out_specs=pl.BlockSpec(memory_space=pltpu.MemorySpace.VMEM),
    )(aw, x, params["w1"], params["w2"], b_eff)


def _supernet_tiled(x, params, aw):
    B, In = x.shape
    Out = params["Out"]
    Kp, Np = params["Kp"], params["Np"]
    tk, tn = params["tk"], params["tn"]

    # Only x is padded per call (tiny vs. the weights, which were padded once).
    tm = min(_round_up(B, 8), 256)
    Mp = _round_up(B, tm)
    xp = x
    if (Mp, Kp) != (B, In):
        xp = jnp.zeros((Mp, Kp), x.dtype).at[:B, :In].set(x)

    b_eff = aw[0] * params["b1p"] + aw[1] * params["b2p"]   # (1, Np), O(N)

    grid = (Mp // tm, Np // tn, Kp // tk)

    flops = 4 * Mp * Kp * Np                                # two dots
    bytes_accessed = 4 * (Mp * Kp + 2 * Kp * Np + Np + Mp * Np)

    out = pl.pallas_call(
        _supernet_tiled_kernel,
        out_shape=jax.ShapeDtypeStruct((Mp, Np), jnp.float32),
        grid_spec=pltpu.PrefetchScalarGridSpec(
            num_scalar_prefetch=1,
            grid=grid,
            in_specs=[
                pl.BlockSpec((tm, tk), lambda i, j, k, aw: (i, k)),   # x
                pl.BlockSpec((tk, tn), lambda i, j, k, aw: (k, j)),   # w1
                pl.BlockSpec((tk, tn), lambda i, j, k, aw: (k, j)),   # w2
                pl.BlockSpec((1, tn), lambda i, j, k, aw: (0, j)),    # b_eff
            ],
            out_specs=pl.BlockSpec((tm, tn), lambda i, j, k, aw: (i, j)),
        ),
        compiler_params=pltpu.CompilerParams(
            # i/j are megacore-parallel on v7x when they have >1 block; the
            # K axis carries the resident-output accumulation.
            dimension_semantics=("parallel", "parallel", "arbitrary"),
            vmem_limit_bytes=params["vmem_limit"],
        ),
        cost_estimate=pl.CostEstimate(
            flops=flops, transcendentals=0, bytes_accessed=bytes_accessed),
    )(aw, xp, params["w1p"], params["w2p"], b_eff)

    return out[:B, :Out]


def supernet_block(x, params, arch_weights):
    """Pallas forward of SuperNetBlock (eval mode). x: (batch, input_size)."""
    # 2-element softmax: glue, done in plain XLA, delivered to SMEM.
    aw = jax.nn.softmax(arch_weights.astype(jnp.float32), axis=-1)
    if params["small"]:
        return _supernet_small(x, params, aw)
    return _supernet_tiled(x, params, aw)


# ----------------------------------------------------------------------------
# Reference + demo
# ----------------------------------------------------------------------------

def reference(x, w1, b1, w2, b2, arch_weights):
    a = jax.nn.softmax(arch_weights, axis=-1)
    y1 = jnp.dot(x, w1, precision=jax.lax.Precision.HIGHEST) + b1
    y2 = jnp.dot(x, w2, precision=jax.lax.Precision.HIGHEST) + b2
    return jnp.maximum(a[0] * y1 + a[1] * y2, 0.0)


if __name__ == "__main__":
    key = jax.random.PRNGKey(0)

    def make_block(k, In, Out):
        k1w, k1b, k2w, k2b = jax.random.split(k, 4)
        bound = 1.0 / (In ** 0.5)
        w1 = jax.random.uniform(k1w, (In, Out), jnp.float32, -bound, bound)
        b1 = jax.random.uniform(k1b, (1, Out), jnp.float32, -bound, bound)
        w2 = jax.random.uniform(k2w, (In, Out), jnp.float32, -bound, bound)
        b2 = jax.random.uniform(k2b, (1, Out), jnp.float32, -bound, bound)
        return w1, b1, w2, b2

    # arch_weights initialized to ones(2)/2, exactly like the module.
    arch_weights = jnp.ones((2,), dtype=jnp.float32) / 2.0

    # Case 1: the module's actual regime (input_size=32, output_size=32,
    # batch=8) -> grid-less single-block fast path, no padding at all.
    kx, kp, key = jax.random.split(key, 3)
    B, In, Out = 8, 32, 32
    x = jax.random.normal(kx, (B, In), dtype=jnp.float32)
    w1, b1, w2, b2 = make_block(kp, In, Out)
    params = prepare_params(w1, b1, w2, b2)          # one-time setup
    out = jax.block_until_ready(supernet_block(x, params, arch_weights))
    ref = reference(x, w1, b1, w2, b2, arch_weights)
    assert out.shape == (B, Out)
    assert jnp.allclose(out, ref, atol=1e-4, rtol=1e-4)

    # Case 2: larger, non-aligned shapes -> tiled kernel (weights padded once
    # at init, fat per-generation tiles, resident-output accumulation).
    kx, kp, key = jax.random.split(key, 3)
    B, In, Out = 9, 1000, 700
    x = jax.random.normal(kx, (B, In), dtype=jnp.float32)
    w1, b1, w2, b2 = make_block(kp, In, Out)
    params = prepare_params(w1, b1, w2, b2)          # one-time setup
    out = jax.block_until_ready(supernet_block(x, params, arch_weights))
    ref = reference(x, w1, b1, w2, b2, arch_weights)
    assert out.shape == (B, Out)
    assert jnp.allclose(out, ref, atol=2e-4, rtol=2e-4)

    print("KERNEL_OK")
</pallas_src>

<mosaic_0001>
module attributes {stable_mosaic.version = 11 : i64} {
  func.func @_supernet_small_kernel(%arg0: memref<2xf32, #tpu.memory_space<smem>>, %arg1: memref<8x32xf32, #tpu.memory_space<vmem>>, %arg2: memref<32x32xf32, #tpu.memory_space<vmem>>, %arg3: memref<32x32xf32, #tpu.memory_space<vmem>>, %arg4: memref<1x32xf32, #tpu.memory_space<vmem>>, %arg5: memref<8x32xf32, #tpu.memory_space<vmem>>) attributes {dimension_semantics = [], scalar_prefetch = 0 : i64, scratch_operands = 0 : i64, tpu.core_type = #tpu.core_type<tc>} {
    %c0 = arith.constant 0 : index
    %0 = memref.load %arg0[%c0] : memref<2xf32, #tpu.memory_space<smem>>
    %c1 = arith.constant 1 : index
    %1 = memref.load %arg0[%c1] : memref<2xf32, #tpu.memory_space<smem>>
    %c0_0 = arith.constant 0 : index
    %c0_1 = arith.constant 0 : index
    %2 = vector.load %arg1[%c0_0, %c0_1] : memref<8x32xf32, #tpu.memory_space<vmem>>, vector<8x32xf32>
    %c0_2 = arith.constant 0 : index
    %c0_3 = arith.constant 0 : index
    %3 = vector.load %arg2[%c0_2, %c0_3] : memref<32x32xf32, #tpu.memory_space<vmem>>, vector<32x32xf32>
    %cst = arith.constant dense<0.000000e+00> : vector<8x32xf32>
    %4 = tpu.matmul %2, %3, %cst {dimension_numbers = #tpu.dot_dimension_numbers<[1], [0], [0], [1], [0, 0, 1, 1], [], []>} : vector<8x32xf32>, vector<32x32xf32>, vector<8x32xf32> -> vector<8x32xf32>
    %5 = vector.broadcast %0 : f32 to vector<8x32xf32>
    %6 = arith.mulf %5, %4 : vector<8x32xf32>
    %c0_4 = arith.constant 0 : index
    %c0_5 = arith.constant 0 : index
    %7 = vector.load %arg3[%c0_4, %c0_5] : memref<32x32xf32, #tpu.memory_space<vmem>>, vector<32x32xf32>
    %cst_6 = arith.constant dense<0.000000e+00> : vector<8x32xf32>
    %8 = tpu.matmul %2, %7, %cst_6 {dimension_numbers = #tpu.dot_dimension_numbers<[1], [0], [0], [1], [0, 0, 1, 1], [], []>} : vector<8x32xf32>, vector<32x32xf32>, vector<8x32xf32> -> vector<8x32xf32>
    %9 = vector.broadcast %1 : f32 to vector<8x32xf32>
    %10 = arith.mulf %9, %8 : vector<8x32xf32>
    %11 = arith.addf %6, %10 : vector<8x32xf32>
    %c0_7 = arith.constant 0 : index
    %c0_8 = arith.constant 0 : index
    %12 = vector.load %arg4[%c0_7, %c0_8] : memref<1x32xf32, #tpu.memory_space<vmem>>, vector<1x32xf32>
    %13 = vector.broadcast %12 : vector<1x32xf32> to vector<8x32xf32>
    %14 = arith.addf %11, %13 : vector<8x32xf32>
    %cst_9 = arith.constant 0.000000e+00 : f32
    %15 = vector.broadcast %cst_9 : f32 to vector<8x32xf32>
    %16 = arith.maximumf %14, %15 : vector<8x32xf32>
    %c0_10 = arith.constant 0 : index
    %c0_11 = arith.constant 0 : index
    %17 = vector.load %arg5[%c0_10, %c0_11] : memref<8x32xf32, #tpu.memory_space<vmem>>, vector<8x32xf32>
    tpu.vector_store %arg5[%c0_10, %c0_11], %16 {strides = array<i32>} : memref<8x32xf32, #tpu.memory_space<vmem>>, vector<8x32xf32>,
    return
  }
}

</mosaic_0001>

<bundles_post_ra>
// kernel: tpu_custom_call.1
= control target key start
LH: loop header
LB: loop body
LE: loop exit
PB: predicated region body
PF: predicated region fallthrough
CT: control target
= control target key end

     0   :  { %10 = vsyncpa [#allocation5], 0  ;;  %s541_s0 = inlined_call_operand.hbm [shape: f32[2], index: 0, kind: input, shape index: {}]   ;;  %s542_s1 = inlined_call_operand.hbm [shape: f32[8,32], index: 1, kind: input, shape index: {}]   ;;  %s543_s2 = inlined_call_operand.hbm [shape: f32[32,32], index: 2, kind: input, shape index: {}]   ;;  %s544_s3 = inlined_call_operand.hbm [shape: f32[32,32], index: 3, kind: input, shape index: {}]   ;;  %s545_s4 = inlined_call_operand.vmem [shape: f32[1,32], index: 4, kind: input, shape index: {}]   ;;  %s546_s5 = inlined_call_operand.hbm [shape: f32[8,32], index: 5, kind: output, shape index: {}]  }
   0x1   :  { %11 = vsyncpa [#allocation3], 0 }
   0x2   :  { %12 = vsyncpa [#allocation8], 0 }
   0x3   :  { %13 = vsyncpa [#allocation4], 0  ;;  %s422_s18 = smov [#allocation7]   ;;  %s316_s22 = scalar_lea.hbm %s543_s2, 512 }
   0x4   :  { %s37_s19 = sshll.u32 %s422_s18, 4  ;;  %p317_p0 = scmp.ne.s32.totalorder %s543_s2, %s316_s22  ;;  %s38_s19 = int_to_ptr.vmem [resolvable:$true] %s37_s19 }
   0x5   :  { %p320_p1 = scmp.lt.u32.totalorder %s316_s22, %s543_s2 }
   0x7   :  { %p322_p2 = pnand %p320_p1, %p317_p0 }
   0x9   :  { %325 = shalt.err (!%p322_p2)
}
   0xa   :  { %s326_s27 = scalar_lea.vmem %s38_s19, 512  ;;  %p331_p4 = scmp.lt.s32.totalorder %s38_s19, %s38_s19 }
   0xb   :  { %p327_p3 = scmp.ne.s32.totalorder %s38_s19, %s326_s27  ;;  %p332_p5 = scmp.lt.s32.totalorder %s326_s27, %s326_s27 }
   0xd   :  { %p333_p6 = por %p332_p5, %p331_p4 }
   0xf   :  { %p334_p7 = pnand %p333_p6, %p327_p3 }
  0x11   :  { %337 = shalt.err (!%p334_p7)
}
  0x12   :  { %s423_s28 = smov 128   ;;  %s424_s29 = smov 8  }
  0x13   :  { %43 = dma.hbm_to_vmem [thread:$0]  %s543_s2, 512, %s38_s19, [#allocation8], %s423_s28, %s423_s28, %s424_s29  }
  0x14   :  { %s338_s9 = scalar_lea.hbm %s541_s0, 16 }
  0x15   :  { %p339_p8 = scmp.ne.s32.totalorder %s541_s0, %s338_s9  ;;  %p342_p9 = scmp.lt.u32.totalorder %s338_s9, %s541_s0 }
  0x17   :  { %p344_p10 = pnand %p342_p9, %p339_p8 }
  0x19   :  { %347 = shalt.err (!%p344_p10)
}
  0x1a   :  { %s425_s14 = smov [#allocation2]   ;;  %s426_s2 = smov [#allocation6]  }
  0x1b   :  { %21 = dma.hbm_to_smem %s541_s0, 16, %s425_s14, [#allocation5]  }
  0x1c   :  { %s28_s17 = sshll.u32 %s426_s2, 4  ;;  %s427_s18 = smov [#allocation9]   ;;  %s29_s17 = int_to_ptr.vmem [resolvable:$true] %s28_s17 }
  0x1d   :  { %s49_s19 = sshll.u32 %s427_s18, 4  ;;  %s348_s22 = scalar_lea.hbm %s542_s1, 128  ;;  %s489_s19 = int_to_ptr.vmem [resolvable:$true] %s49_s19 }
  0x1e   :  { %p349_p11 = scmp.ne.s32.totalorder %s542_s1, %s348_s22  ;;  %p352_p12 = scmp.lt.u32.totalorder %s348_s22, %s542_s1 }
  0x20   :  { %p354_p13 = pnand %p352_p12, %p349_p11 }
  0x22   :  { %357 = shalt.err (!%p354_p13)
}
  0x23   :  { %s358_s0 = scalar_lea.vmem %s29_s17, 128  ;;  %p363_p1 = scmp.lt.s32.totalorder %s29_s17, %s29_s17 }
  0x24   :  { %p359_p0 = scmp.ne.s32.totalorder %s29_s17, %s358_s0  ;;  %p364_p2 = scmp.lt.s32.totalorder %s358_s0, %s358_s0 }
  0x26   :  { %p365_p3 = por %p364_p2, %p363_p1 }
  0x28   :  { %p366_p4 = pnand %p365_p3, %p359_p0 }
  0x2a   :  { %369 = shalt.err (!%p366_p4)
}
  0x2b   :  { %31 = dma.hbm_to_vmem [thread:$0]  %s542_s1, 128, %s29_s17, [#allocation3]  }
  0x2c   :  { %s370_s8 = scalar_lea.hbm %s544_s3, 512 }
  0x2d   :  { %p371_p5 = scmp.ne.s32.totalorder %s544_s3, %s370_s8  ;;  %p374_p6 = scmp.lt.u32.totalorder %s370_s8, %s544_s3 }
  0x2f   :  { %p376_p7 = pnand %p374_p6, %p371_p5 }
  0x31   :  { %379 = shalt.err (!%p376_p7)
}
  0x32   :  { %s380_s13 = scalar_lea.vmem %s489_s19, 512  ;;  %p385_p9 = scmp.lt.s32.totalorder %s489_s19, %s489_s19 }
  0x33   :  { %p381_p8 = scmp.ne.s32.totalorder %s489_s19, %s380_s13  ;;  %p386_p10 = scmp.lt.s32.totalorder %s380_s13, %s380_s13 }
  0x35   :  { %p387_p11 = por %p386_p10, %p385_p9 }
  0x37   :  { %p388_p12 = pnand %p387_p11, %p381_p8 }
  0x39   :  { %391 = shalt.err (!%p388_p12)
}
  0x3a   :  { %55 = dma.hbm_to_vmem [thread:$0]  %s544_s3, 512, %s489_s19, [#allocation8], %s423_s28, %s423_s28, %s424_s29  }
  0x3b   :  { %414 = dma.done.wait [#allocation5], 16  }
  0x3c   :  { %415 = vsyncadd [#allocation5], 4294967280 }
  0x3d   :  { %416 = dma.done.wait [#allocation3], 128  }
  0x3e   :  { %417 = vsyncadd [#allocation3], 4294967168 }
  0x3f   :  { %418 = dma.done.wait [#allocation8], 1024  }
  0x40   :  { %419 = vsyncadd [#allocation8], 4294966272 }
  0x41   :  { %70 = sfence }
  0x42   :  { %v74_v0 = vld [vmem:[#allocation7] sm:$0xff]  ;;  %v75_v1 = vld [vmem:[#allocation7 + $0x8] sm:$0xff]  ;;  %v428_v3 = vmov 0.0|0.0   ;;  %v76_v6 = vld [vmem:[#allocation7 + $0x10] sm:$0xff]  ;;  %vm429_vm0 = vmmov 0   ;;  %v430_v11 = vmov 0.0  }
  0x43   :  { %v154_v2 = vld [vmem:[#allocation9] sm:$0xff]  ;;  %294 = vmatprep.subr.bf16.mxu0 %v428_v3  ;;  %300 = vmatprep.subr.bf16.mxu1 %v428_v3  ;;  %v295_v4 = vpack.c.bf16 %v75_v1, %v74_v0  ;;  %v155_v5 = vld [vmem:[#allocation9 + $0x8] sm:$0xff]  ;;  %v77_v7 = vld [vmem:[#allocation7 + $0x18] sm:$0xff]  ;;  %vm78_vm1 = vcmask 261120   ;;  %s71_s3 = sld [smem:[#allocation2]]  ;;  %s258_s28 = sld [smem:[#allocation2 + $0x1]] }
  0x44   :  { %v301_v8 = vpack.c.bf16 %v155_v5, %v154_v2  ;;  %v156_v9 = vld [vmem:[#allocation9 + $0x10] sm:$0xff]  ;;  %v157_v10 = vld [vmem:[#allocation9 + $0x18] sm:$0xff]  ;;  %280 = vmatprep.mubr.msk.f32.mxu0 %vm429_vm0, %v430_v11  ;;  %291 = vmatprep.mubr.msk.f32.mxu1 %vm429_vm0, %v430_v11  ;;  %v298_v12 = vpack.c.bf16 %v77_v7, %v76_v6  ;;  %s431_s16 = smov [#allocation10]  }
  0x45   :  { %296 = vmatpush3.bf16.msra.mxu0 %v295_v4  ;;  %v304_v13 = vpack.c.bf16 %v157_v10, %v156_v9  ;;  %v73_v14 = vld [vmem:[#allocation6] sm:$0xff]  ;;  %s247_s2 = sshll.u32 %s431_s16, 4  ;;  %s248_s2 = int_to_ptr.vmem [resolvable:$true] %s247_s2 }
  0x46   :  { %302 = vmatpush3.bf16.msra.mxu1 %v301_v8  ;;  %297 = vmatprep.subr.bf16.mxu0 %v428_v3  ;;  %v261_v23 = vld [vmem:[%s545_s4] ss:$0 sm:$0xff]  ;;  %s392_s17 = scalar_lea.vmem %s248_s2, 128  ;;  %p397_p0 = scmp.lt.s32.totalorder %s248_s2, %s248_s2 }
  0x47   :  { %303 = vmatprep.subr.bf16.mxu1 %v428_v3  ;;  %p393_p13 = scmp.ne.s32.totalorder %s248_s2, %s392_s17  ;;  %p398_p1 = scmp.lt.s32.totalorder %s392_s17, %s392_s17 }
  0x49   :  { %299 = vmatpush3.bf16.msra.mxu0 %v298_v12  ;;  %v152_v15 = vstv %s71_s3  ;;  %v228_v16 = vstv %s258_s28  ;;  %p399_p2 = por %p398_p1, %p397_p0 }
  0x4a   :  { %305 = vmatpush3.bf16.msra.mxu1 %v304_v13 }
  0x4b   :  { %p400_p3 = pnand %p399_p2, %p393_p13 }
  0x4c   :  { %281 = vmatmul.mubr.msk.f32.vlgmr.msra.gmra.mrb[0].mxu0 %vm78_vm1, %v73_v14 }
  0x4d   :  { %292 = vmatmul.mubr.msk.f32.vlgmr.msra.gmra.mrb[0].mxu1 %vm78_vm1, %v73_v14 }
 0x11f   :  { %v148_v17 = vpop.f32.mrb[0].mxu0 }
 0x120   :  { %v153_v18 = vmul.f32 %v152_v15, %v148_v17  ;;  %v224_v19 = vpop.f32.mrb[0].mxu1  ;;  %v282_v20 = vpop.f32.mrb[1].mxu0 }
 0x121   :  { %v229_v21 = vmul.f32 %v228_v16, %v224_v19  ;;  %v293_v22 = vpop.f32.mrb[1].mxu1 }
 0x123   :  { %v230_v24 = vadd.f32 %v229_v21, %v153_v18 }
 0x125   :  { %v238_v25 = vadd.f32 %v261_v23, %v230_v24 }
 0x127   :  { %v239_v26 = vmax.f32 %v238_v25, 0.0 }
 0x129   :  { %240 = vst.msk [vmem:[#allocation10] sm:$0xff] %vm78_vm1, %v239_v26 }
 0x12a   :  { %403 = shalt.err (!%p400_p3)
}
 0x12b   :  { %s404_s20 = scalar_lea.hbm %s546_s5, 128 }
 0x12c   :  { %p405_p4 = scmp.ne.s32.totalorder %s546_s5, %s404_s20  ;;  %p408_p5 = scmp.lt.u32.totalorder %s404_s20, %s546_s5 }
 0x12e   :  { %p410_p6 = pnand %p408_p5, %p405_p4 }
 0x130   :  { %413 = shalt.err (!%p410_p6)
}
 0x131   :  { %250 = dma.vmem_to_hbm [thread:$0]  %s248_s2, 128, %s546_s5, [#allocation4]  }
 0x132   :  { %420 = dma.done.wait [#allocation4], 128  }
 0x133   :  { %421 = vsyncadd [#allocation4], 4294967168 }
 0x134   :  { %254 = vsyncpa [#allocation3], 1 }
 0x135   :  { %255 = vsyncpa [#allocation8], 1 }
 0x136   :  { %256 = vsyncpa [#allocation4], 1 }
 0x137   :  { %257 = vsyncpa [#allocation5], 1 }

</bundles_post_ra>
